<compile_context>
chip_gen: v5e
topology: v5e:2x2
jax: 0.10.0
libtpu: 0.0.40
codegen_flags: <defaults>
</compile_context>

<pallas_src>
import functools

import jax
import jax.numpy as jnp
from jax.experimental import pallas as pl
from jax.experimental.pallas import tpu as pltpu


def _focal_loss_kernel(logits_ref, labels_ref, out_ref, acc_ref,
                       *, alpha, gamma, n_valid, tn):
    i = pl.program_id(0)

    @pl.when(i == 0)
    def _init():
        acc_ref[0] = jnp.float32(0.0)

    logits = logits_ref[...].astype(jnp.float32)      # (C, TN) lane-dense tile
    labels = labels_ref[...]                          # (1, TN) int32

    # Numerically stable log-softmax denominator (logsumexp over the C rows).
    m = jnp.max(logits, axis=0, keepdims=True)                          # (1, TN)
    lse = jnp.log(jnp.sum(jnp.exp(logits - m), axis=0, keepdims=True)) + m

    # Target-class logit via compare+select over the C sublane rows
    # (no materialized (N, C) one-hot temporary).
    class_ids = jax.lax.broadcasted_iota(jnp.int32, logits.shape, 0)    # (C, TN)
    tgt = jnp.sum(jnp.where(class_ids == labels, logits, 0.0),
                  axis=0, keepdims=True)                                # (1, TN)

    # Per-sample CE, masked to the valid (un-padded) columns of this tile.
    col = i * tn + jax.lax.broadcasted_iota(jnp.int32, (1, tn), 1)
    ce = jnp.where(col < n_valid, lse - tgt, 0.0)                       # (1, TN)

    # Running CE sum in an SMEM scalar (no lane-masked VMEM store per step).
    acc_ref[0] += jnp.sum(ce)

    @pl.when(i == pl.num_programs(0) - 1)
    def _finalize():
        ce_mean = acc_ref[0] * (1.0 / n_valid)        # CrossEntropyLoss mean
        pt = jnp.exp(-ce_mean)
        focal = alpha * (1.0 - pt) ** gamma * ce_mean
        out_ref[0, 0] = focal.astype(out_ref.dtype)


def focal_loss(prediction, annotation, num_classes=4, alpha=0.25, gamma=2,
               tile_n=8192):
    """prediction: (N, C) float logits; annotation: (N,) integer class ids."""
    n, c = prediction.shape
    assert c == num_classes

    # Lane-dense layout: classes on the sublane axis, samples on the lane axis.
    # (Keep the incoming dtype — do not widen bf16 logits before the call.)
    logits_t = prediction.T                               # (C, N)
    labels = annotation.astype(jnp.int32).reshape(1, n)   # (1, N)

    # Tile size: multiple of 128 lanes, large enough to amortize the ~0.35us
    # per-grid-step overhead, small enough for v7x's 32 MiB default scoped
    # VMEM with double-buffering (f32 (4, 8192) tile ~= 128 KiB per buffer).
    tn = min(int(tile_n), pl.cdiv(n, 128) * 128)
    n_pad = pl.cdiv(n, tn) * tn
    if n_pad != n:
        logits_t = jnp.pad(logits_t, ((0, 0), (0, n_pad - n)))
        labels = jnp.pad(labels, ((0, 0), (0, n_pad - n)))

    kernel = functools.partial(_focal_loss_kernel, alpha=float(alpha),
                               gamma=gamma, n_valid=n, tn=tn)

    # TODO(synk): on v7x (2 TensorCores) the N axis could additionally be split
    # "parallel" into per-core partial sums; kept a single "arbitrary"
    # accumulation axis here for portability across v5e/v6e/v7x.
    out = pl.pallas_call(
        kernel,
        out_shape=jax.ShapeDtypeStruct((1, 1), jnp.float32),
        grid_spec=pltpu.PrefetchScalarGridSpec(
            num_scalar_prefetch=0,
            grid=(n_pad // tn,),
            in_specs=[
                pl.BlockSpec((c, tn), lambda i: (0, i)),
                pl.BlockSpec((1, tn), lambda i: (0, i)),
            ],
            out_specs=pl.BlockSpec(memory_space=pltpu.MemorySpace.SMEM),
            scratch_shapes=[pltpu.SMEM((1,), jnp.float32)],
        ),
        compiler_params=pltpu.CompilerParams(
            dimension_semantics=("arbitrary",)),
    )(logits_t, labels)
    return out[0, 0]


def _focal_loss_ref(prediction, annotation, alpha=0.25, gamma=2):
    # Pure-JAX reference of torch CrossEntropyLoss (mean) + focal transform.
    logp = jax.nn.log_softmax(prediction.astype(jnp.float32), axis=-1)
    ce = -jnp.take_along_axis(logp, annotation[:, None].astype(jnp.int32), axis=-1)
    ce_mean = jnp.mean(ce)
    pt = jnp.exp(-ce_mean)
    return alpha * (1.0 - pt) ** gamma * ce_mean


if __name__ == "__main__":
    num_classes = 4
    n_samples = 64  # e.g. batch=2 * 32 points flattened, as PointNet seg does

    key = jax.random.PRNGKey(0)
    k1, k2 = jax.random.split(key)
    prediction = jax.random.normal(k1, (n_samples, num_classes), dtype=jnp.float32)
    annotation = jax.random.randint(k2, (n_samples,), 0, num_classes, dtype=jnp.int32)

    out = focal_loss(prediction, annotation, num_classes=num_classes,
                     alpha=0.25, gamma=2)
    out = jax.block_until_ready(out)

    ref = _focal_loss_ref(prediction, annotation, alpha=0.25, gamma=2)
    assert jnp.allclose(out, ref, rtol=1e-5, atol=1e-6), (out, ref)

    print("KERNEL_OK")
</pallas_src>

<mosaic_0001>
module attributes {stable_mosaic.version = 11 : i64} {
  func.func @_focal_loss_kernel(%arg0: i32, %arg1: memref<4x128xf32, #tpu.memory_space<vmem>>, %arg2: memref<1x128xi32, #tpu.memory_space<vmem>>, %arg3: memref<1x1xf32, #tpu.memory_space<smem>>, %arg4: memref<1xf32, #tpu.memory_space<smem>>) attributes {dimension_semantics = [#tpu.dimension_semantics<arbitrary>], iteration_bounds = array<i64: 1>, scalar_prefetch = 0 : i64, scratch_operands = 1 : i64, tpu.core_type = #tpu.core_type<tc>, window_params = [{transform_indices = @transform_0, window_bounds = array<i64: 4, 128>}, {transform_indices = @transform_1, window_bounds = array<i64: 1, 128>}, {transform_indices = @transform_2, window_bounds = array<i64: 1, 1>}]} {
    %c0_i32 = arith.constant 0 : i32
    %0 = arith.cmpi eq, %arg0, %c0_i32 : i32
    %1 = arith.extui %0 : i1 to i32
    %c0_i32_0 = arith.constant 0 : i32
    %2 = arith.cmpi ne, %1, %c0_i32_0 : i32
    scf.if %2 {
      %cst_13 = arith.constant 0.000000e+00 : f32
      %c0_14 = arith.constant 0 : index
      %40 = memref.load %arg4[%c0_14] : memref<1xf32, #tpu.memory_space<smem>>
      memref.store %cst_13, %arg4[%c0_14] : memref<1xf32, #tpu.memory_space<smem>>
    } else {
    }
    %c0 = arith.constant 0 : index
    %c0_1 = arith.constant 0 : index
    %3 = vector.load %arg1[%c0, %c0_1] : memref<4x128xf32, #tpu.memory_space<vmem>>, vector<4x128xf32>
    %c0_2 = arith.constant 0 : index
    %c0_3 = arith.constant 0 : index
    %4 = vector.load %arg2[%c0_2, %c0_3] : memref<1x128xi32, #tpu.memory_space<vmem>>, vector<1x128xi32>
    %cst = arith.constant dense<0xFF800000> : vector<128xf32>
    %5 = vector.multi_reduction <maximumf>, %3, %cst [0] : vector<4x128xf32> to vector<128xf32>
    %6 = vector.shape_cast %5 : vector<128xf32> to vector<1x128xf32>
    %7 = vector.broadcast %6 : vector<1x128xf32> to vector<4x128xf32>
    %8 = arith.subf %3, %7 : vector<4x128xf32>
    %9 = math.exp %8 : vector<4x128xf32>
    %cst_4 = arith.constant dense<0.000000e+00> : vector<128xf32>
    %10 = vector.multi_reduction <add>, %9, %cst_4 [0] : vector<4x128xf32> to vector<128xf32>
    %11 = vector.shape_cast %10 : vector<128xf32> to vector<1x128xf32>
    %12 = math.log %11 : vector<1x128xf32>
    %13 = arith.addf %12, %6 : vector<1x128xf32>
    %14 = tpu.iota {dimensions = array<i32: 0>} : vector<4x128xi32>
    %15 = vector.broadcast %4 : vector<1x128xi32> to vector<4x128xi32>
    %16 = arith.cmpi eq, %14, %15 : vector<4x128xi32>
    %cst_5 = arith.constant 0.000000e+00 : f32
    %17 = vector.broadcast %cst_5 : f32 to vector<4x128xf32>
    %18 = arith.select %16, %3, %17 : vector<4x128xi1>, vector<4x128xf32>
    %cst_6 = arith.constant dense<0.000000e+00> : vector<128xf32>
    %19 = vector.multi_reduction <add>, %18, %cst_6 [0] : vector<4x128xf32> to vector<128xf32>
    %20 = vector.shape_cast %19 : vector<128xf32> to vector<1x128xf32>
    %c128_i32 = arith.constant 128 : i32
    %21 = arith.muli %arg0, %c128_i32 : i32
    %22 = tpu.iota {dimensions = array<i32: 1>} : vector<1x128xi32>
    %23 = vector.broadcast %21 : i32 to vector<1x128xi32>
    %24 = arith.addi %23, %22 : vector<1x128xi32>
    %c64_i32 = arith.constant 64 : i32
    %25 = vector.broadcast %c64_i32 : i32 to vector<1x128xi32>
    %26 = arith.cmpi slt, %24, %25 : vector<1x128xi32>
    %27 = arith.subf %13, %20 : vector<1x128xf32>
    %cst_7 = arith.constant 0.000000e+00 : f32
    %28 = vector.broadcast %cst_7 : f32 to vector<1x128xf32>
    %29 = arith.select %26, %27, %28 : vector<1x128xi1>, vector<1x128xf32>
    %c0_8 = arith.constant 0 : index
    %30 = memref.load %arg4[%c0_8] : memref<1xf32, #tpu.memory_space<smem>>
    %31 = vector.shape_cast %29 : vector<1x128xf32> to vector<1x1x128xf32>
    %cst_9 = arith.constant dense<0.000000e+00> : vector<1xf32>
    %32 = vector.multi_reduction <add>, %31, %cst_9 [1, 2] : vector<1x1x128xf32> to vector<1xf32>
    %33 = vector.shape_cast %32 : vector<1xf32> to vector<1x1x1xf32>
    %34 = vector.extract %33[0, 0, 0] : f32 from vector<1x1x1xf32>
    %35 = arith.addf %30, %34 : f32
    %c0_10 = arith.constant 0 : index
    %36 = memref.load %arg4[%c0_10] : memref<1xf32, #tpu.memory_space<smem>>
    memref.store %35, %arg4[%c0_10] : memref<1xf32, #tpu.memory_space<smem>>
    %c0_i32_11 = arith.constant 0 : i32
    %37 = arith.cmpi eq, %arg0, %c0_i32_11 : i32
    %38 = arith.extui %37 : i1 to i32
    %c0_i32_12 = arith.constant 0 : i32
    %39 = arith.cmpi ne, %38, %c0_i32_12 : i32
    scf.if %39 {
      %c0_13 = arith.constant 0 : index
      %40 = memref.load %arg4[%c0_13] : memref<1xf32, #tpu.memory_space<smem>>
      %cst_14 = arith.constant 1.562500e-02 : f32
      %41 = arith.mulf %40, %cst_14 : f32
      %cst_15 = arith.constant 0.000000e+00 : f32
      %42 = arith.subf %cst_15, %41 : f32
      %43 = math.exp %42 : f32
      %cst_16 = arith.constant 1.000000e+00 : f32
      %44 = arith.subf %cst_16, %43 : f32
      %45 = arith.mulf %44, %44 : f32
      %cst_17 = arith.constant 2.500000e-01 : f32
      %46 = arith.mulf %cst_17, %45 : f32
      %47 = arith.mulf %46, %41 : f32
      %c0_18 = arith.constant 0 : index
      %c0_19 = arith.constant 0 : index
      %48 = memref.load %arg3[%c0_18, %c0_19] : memref<1x1xf32, #tpu.memory_space<smem>>
      memref.store %47, %arg3[%c0_18, %c0_19] : memref<1x1xf32, #tpu.memory_space<smem>>
    } else {
    }
    return
  }
  func.func @transform_0(%arg0: i32) -> (i32, i32) {
    %c0_i32 = arith.constant 0 : i32
    %c0_i32_0 = arith.constant 0 : i32
    return %c0_i32, %arg0 : i32, i32
  }
  func.func @transform_1(%arg0: i32) -> (i32, i32) {
    %c0_i32 = arith.constant 0 : i32
    %c0_i32_0 = arith.constant 0 : i32
    return %c0_i32, %arg0 : i32, i32
  }
  func.func @transform_2(%arg0: i32) -> (i32, i32) {
    %c0_i32 = arith.constant 0 : i32
    %c0_i32_0 = arith.constant 0 : i32
    %c0_i32_1 = arith.constant 0 : i32
    return %c0_i32, %c0_i32_0 : i32, i32
  }
}

</mosaic_0001>

<bundles_post_ra>
// kernel: tpu_custom_call.1
= control target key start
LH: loop header
LB: loop body
LE: loop exit
PB: predicated region body
PF: predicated region fallthrough
CT: control target
= control target key end

     0   :  { %7 = vsyncpa [#allocation4], 0  ;;  %s247_s0 = inlined_call_operand.hbm [shape: f32[4,128], index: 0, kind: input, shape index: {}]   ;;  %s248_s1 = inlined_call_operand.hbm [shape: s32[1,128], index: 1, kind: input, shape index: {}]   ;;  %s249_s2 = inlined_call_operand.hbm [shape: f32[1,1], index: 2, kind: output, shape index: {}]  }
   0x1   :  { %8 = vsyncpa [#allocation7], 0 }
   0x2   :  { %9 = vsyncpa [#allocation5], 0  ;;  %s15_s11 = sshll.u32 %s247_s0, 4  ;;  %s217_s12 = smov [#allocation3]   ;;  %s16_s11 = int_to_ptr.hbm [resolvable:$true] %s15_s11 }
   0x3   :  { %s17_s13 = sshll.u32 %s217_s12, 4  ;;  %s26_s16 = sshll.u32 %s248_s1, 4  ;;  %s18_s13 = int_to_ptr.vmem [resolvable:$true] %s17_s13  ;;  %s27_s16 = int_to_ptr.hbm [resolvable:$true] %s26_s16 }
   0x4   :  { %20 = dma.hbm_to_vmem [thread:$0]  %s16_s11, 64, %s18_s13, [#allocation4]  }
   0x5   :  { %s218_s17 = smov [#allocation6]  }
   0x6   :  { %s28_s18 = sshll.u32 %s218_s17, 4  ;;  %s29_s18 = int_to_ptr.vmem [resolvable:$true] %s28_s18 }
   0x7   :  { %31 = dma.hbm_to_vmem [thread:$0]  %s27_s16, 16, %s29_s18, [#allocation7]  }
   0x8   :  { %211 = dma.done.wait [#allocation4], 64  }
   0x9   :  { %212 = vsyncadd [#allocation4], 4294967232 }
   0xa   :  { %213 = dma.done.wait [#allocation7], 16  }
   0xb   :  { %214 = vsyncadd [#allocation7], 4294967280  ;;  %vm48_vm0 = vcmask 1043456   ;;  %v46_v0 = vld [vmem:[#allocation3] sm:$0xf]  ;;  %v69_v6 = vlaneseq  ;;  %vm90_vm3 = vcmask 1040384  }
   0xc   :  { %v49_v1 = vsel %vm48_vm0, %v46_v0, -inf  ;;  %v144_v10 = vld [vmem:[#allocation6] ss:$0 sm:$0xff]  ;;  %s125_s25 = sshll.u32 %s249_s2, 4  ;;  %s219_s28 = smov [#allocation8]   ;;  %s126_s25 = int_to_ptr.hbm [resolvable:$true] %s125_s25 }
   0xd   :  { %v50_v2 = vrot.slane %v49_v1, 4  ;;  %v70_v9 = vshrl.u32 %v69_v6, 7  ;;  %v83_v29 = vand.u32 127, %v69_v6 }
   0xf   :  { %v51_v3 = vmax.f32 %v49_v1, %v50_v2  ;;  %vm72_vm1 = vcmp.eq.s32.totalorder %v70_v9, %v144_v10  ;;  %vm86_vm2 = vcmp.lt.s32.totalorder %v83_v29, 64 }
  0x10   :  { %v73_v13 = vsel %vm72_vm1, %v46_v0, 0.0 }
  0x11   :  { %v52_v4 = vrot.slane %v51_v3, 2  ;;  %v74_v14 = vsel %vm48_vm0, %v73_v13, 0.0 }
  0x12   :  { %v75_v17 = vrot.slane %v74_v14, 4 }
  0x13   :  { %v53_v5 = vmax.f32 %v51_v3, %v52_v4 }
  0x14   :  { %v76_v20 = vadd.f32 %v75_v17, %v74_v14 }
  0x15   :  { %v54_v7 = vrot.slane %v53_v5, 1 }
  0x16   :  { %v77_v23 = vrot.slane %v76_v20, 2 }
  0x17   :  { %v55_v8 = vmax.f32 %v53_v5, %v54_v7 }
  0x18   :  { %v78_v26 = vadd.f32 %v77_v23, %v76_v20 }
  0x19   :  { %v56_v11 = vsub.f32 %v46_v0, %v55_v8 }
  0x1a   :  { %v79_v27 = vrot.slane %v78_v26, 1 }
  0x1b   :  { %v57_v12 = vmul.f32 1.442695, %v56_v11 }
  0x1c   :  { %v80_v31 = vadd.f32 %v79_v27, %v78_v26 }
  0x1d   :  { %145 = vpow2.f32 %v57_v12 }
  0x23   :  { %v146_v15 = vpop.eup %145 }
  0x24   :  { %v59_v16 = vsel %vm48_vm0, %v146_v15, 0.0 }
  0x25   :  { %v60_v18 = vrot.slane %v59_v16, 4 }
  0x27   :  { %v61_v19 = vadd.f32 %v60_v18, %v59_v16 }
  0x29   :  { %v62_v21 = vrot.slane %v61_v19, 2 }
  0x2b   :  { %v63_v22 = vadd.f32 %v62_v21, %v61_v19 }
  0x2d   :  { %v64_v24 = vrot.slane %v63_v22, 1 }
  0x2f   :  { %v65_v25 = vadd.f32 %v64_v24, %v63_v22 }
  0x31   :  { %147 = vlog2.f32 %v65_v25 }
  0x37   :  { %v148_v28 = vpop.eup %147 }
  0x38   :  { %v67_v30 = vmul.f32 0.6931472, %v148_v28 }
  0x3a   :  { %v68_v32 = vadd.f32 %v67_v30, %v55_v8 }
  0x3c   :  { %v87_v33 = vsub.f32 %v68_v32, %v80_v31 }
  0x3e   :  { %v88_v34 = vsel %vm86_vm2, %v87_v33, 0.0 }
  0x3f   :  { %v91_v35 = vsel %vm90_vm3, %v88_v34, 0.0 }
  0x40   :  { %92 = vadd.xlane.f32.xlu0 %v91_v35 }
  0xb3   :  { %v93_v36 = vpop.xlane.xlu0 %92 }
  0xb4   :  { %v94_v37 = vrot.slane %v93_v36, 4 }
  0xb6   :  { %v95_v38 = vadd.f32 %v94_v37, %v93_v36 }
  0xb8   :  { %v96_v39 = vrot.slane %v95_v38, 2 }
  0xba   :  { %v97_v40 = vadd.f32 %v96_v39, %v95_v38 }
  0xbc   :  { %v98_v41 = vrot.slane %v97_v40, 1 }
  0xbe   :  { %v99_v42 = vadd.f32 %v98_v41, %v97_v40 }
  0xc0   :  { %137 = vpush %v99_v42 }
  0xf1   :  { %s138_s0 = spop %137 }
  0xf2   :  { %s108_s1 = smul.f32 0.015625, %s138_s0 }
  0xf4   :  { %s109_s19 = ssub.f32 0.0, %s108_s1 }
  0xf6   :  { %v110_v43 = vstv %s109_s19 }
  0xf7   :  { %v111_v44 = vmul.f32 1.442695, %v110_v43 }
  0xf9   :  { %149 = vpow2.f32 %v111_v44 }
  0xff   :  { %v150_v45 = vpop.eup %149 }
 0x100   :  { %139 = vpush %v150_v45 }
 0x131   :  { %s140_s20 = spop %139 }
 0x132   :  { %s114_s21 = ssub.f32 1.0, %s140_s20 }
 0x134   :  { %s115_s22 = smul.f32 %s114_s21, %s114_s21 }
 0x136   :  { %s116_s26 = smul.f32 0.25, %s115_s22 }
 0x138   :  { %s117_s27 = smul.f32 %s116_s26, %s108_s1 }
 0x13a   :  { %119 = sst [smem:[#allocation8]] %s117_s27 }
 0x13b   :  { %128 = dma.smem_to_hbm %s219_s28, 16, %s126_s25, [#allocation5]  }
 0x13c   :  { %215 = dma.done.wait [#allocation5], 16  }
 0x13d   :  { %216 = vsyncadd [#allocation5], 4294967280 }
 0x13e   :  { %133 = sfence }
 0x13f   :  { %134 = vsyncpa [#allocation4], 1 }
 0x140   :  { %135 = vsyncpa [#allocation7], 1 }
 0x141   :  { %136 = vsyncpa [#allocation5], 1 }

</bundles_post_ra>
